<compile_context>
chip_gen: v7x
topology: tpu7x:2x2x1
jax: 0.10.0
libtpu: 0.0.40
codegen_flags: <defaults>
</compile_context>

<pallas_src>
import functools

import jax
import jax.numpy as jnp
from jax.experimental import pallas as pl
from jax.experimental.pallas import tpu as pltpu

INPUT_SIZE = 300
H1 = 128
H2 = 64
OUT = 1


def _round_up(x, m):
    return (x + m - 1) // m * m


def _mlp_kernel(x_ref, w1_ref, b1_ref, w2_ref, b2_ref, w3_ref, b3_ref, o_ref):
    # fc1: cast x to bf16 in-kernel (no-op if the caller already supplies bf16),
    # bf16 x bf16 -> f32 accumulate on the MXU, bias + ReLU in f32.
    x = x_ref[...].astype(jnp.bfloat16)
    h1 = jnp.dot(x, w1_ref[...], preferred_element_type=jnp.float32)
    h1 = jnp.maximum(h1 + b1_ref[...], 0.0)
    # dropout -> identity (eval mode)

    # fc2: bf16 x bf16 -> f32 accumulate, bias + ReLU in f32.
    h2 = jnp.dot(h1.astype(jnp.bfloat16), w2_ref[...],
                 preferred_element_type=jnp.float32)
    h2 = jnp.maximum(h2 + b2_ref[...], 0.0)
    # dropout -> identity (eval mode)

    # fc3 (64 -> 1): keep it off the MXU (N=1 would waste a full vmatmul stream).
    # Reduce first (VPU multiply + lane reduce -> (bb, 1)), then move only that single
    # column through the XLU to get the lane-dense (1, bb) output row.
    o_col = jnp.sum(h2 * w3_ref[...], axis=-1, keepdims=True) + b3_ref[...]   # (bb, 1)
    o_ref[...] = o_col.T.astype(o_ref.dtype)                                  # (1, bb)


@functools.partial(jax.jit, static_argnames=("block_b",))
def link_predictor_forward(x, params, block_b=2048):
    """x: [B, INPUT_SIZE] float32 or bfloat16 -> [B, 1] float32."""
    w1, b1, w2, b2, w3, b3 = params
    B, D = x.shape
    assert D == INPUT_SIZE
    assert block_b % 128 == 0, "block_b must be a multiple of 128"

    # Tile selection:
    #   * clamp to the batch (rounded to 128) for small B,
    #   * guarantee >= 2 grid tiles for mid/large B so v7x's 2 TensorCores both work,
    #   * keep everything a multiple of 128 (lane-dense output, bf16 sublane packing).
    bb = min(block_b, _round_up(B, 128))
    if B > 256:
        bb = min(bb, _round_up(-(-B // 2), 128))   # ceil(B/2) rounded up to 128
    Bp = _round_up(B, bb)
    num_tiles = Bp // bb

    # Only pad the batch dim, and only when needed (no K padding, no host-side cast of x).
    x_in = x if Bp == B else jnp.pad(x, ((0, Bp - B), (0, 0)))

    # Weights are tiny and resident: cast the matmul operands to bf16 once host-side.
    w1_b = w1.astype(jnp.bfloat16)
    w2_b = w2.astype(jnp.bfloat16)
    w3_row = w3.reshape(1, H2).astype(jnp.float32)   # (1, 64) row for the VPU fc3 path
    b3_2d = b3.reshape(1, OUT).astype(jnp.float32)

    in_specs = [
        pl.BlockSpec((bb, INPUT_SIZE), lambda i: (i, 0)),   # x tile, full K (300 == full dim)
        pl.BlockSpec((INPUT_SIZE, H1), lambda i: (0, 0)),   # w1 (resident)
        pl.BlockSpec((1, H1), lambda i: (0, 0)),            # b1
        pl.BlockSpec((H1, H2), lambda i: (0, 0)),           # w2 (resident)
        pl.BlockSpec((1, H2), lambda i: (0, 0)),            # b2
        pl.BlockSpec((1, H2), lambda i: (0, 0)),            # w3 as a (1, 64) row
        pl.BlockSpec((1, OUT), lambda i: (0, 0)),           # b3 as (1, 1)
    ]
    # Lane-dense output: a (1, Bp) row buffer tiled along lanes (full unmasked stores).
    out_spec = pl.BlockSpec((1, bb), lambda i: (0, i))

    # Memory-bound cost hint for the XLA scheduler.
    x_bytes = Bp * INPUT_SIZE * x_in.dtype.itemsize
    w_bytes = (INPUT_SIZE * H1 + H1 * H2) * 2 + (H1 + H2 + H2 + OUT) * 4
    cost = pl.CostEstimate(
        flops=2 * Bp * (INPUT_SIZE * H1 + H1 * H2 + H2 * OUT),
        transcendentals=0,
        bytes_accessed=x_bytes + w_bytes + Bp * 4,
    )

    out_row = pl.pallas_call(
        _mlp_kernel,
        out_shape=jax.ShapeDtypeStruct((1, Bp), jnp.float32),
        grid_spec=pltpu.PrefetchScalarGridSpec(
            num_scalar_prefetch=0,
            grid=(num_tiles,),
            in_specs=in_specs,
            out_specs=out_spec,
        ),
        compiler_params=pltpu.CompilerParams(
            dimension_semantics=("parallel",),   # multi-tile grids shard across v7x's 2 TCs
        ),
        cost_estimate=cost,
    )(x_in, w1_b, b1, w2_b, b2, w3_row, b3_2d)

    # Free layout plumbing: (1, Bp) -> (Bp, 1) -> (B, 1).
    # NOTE: padded tail rows carry ReLU(bias)-propagated garbage; the [:B] slice removes them.
    return out_row.reshape(Bp, 1)[:B]


def init_params(key):
    """Deterministic init mimicking nn.Linear default (U(-1/sqrt(fan_in), +1/sqrt(fan_in)))."""
    k1, k2, k3, k4, k5, k6 = jax.random.split(key, 6)

    def lin_init(kw, kb, fan_in, fan_out):
        bound = 1.0 / jnp.sqrt(jnp.float32(fan_in))
        w = jax.random.uniform(kw, (fan_in, fan_out), jnp.float32, -bound, bound)
        b = jax.random.uniform(kb, (1, fan_out), jnp.float32, -bound, bound)
        return w, b

    w1, b1 = lin_init(k1, k2, INPUT_SIZE, H1)
    w2, b2 = lin_init(k3, k4, H1, H2)
    w3, b3 = lin_init(k5, k6, H2, OUT)
    return (w1, b1, w2, b2, w3, b3)


def reference_forward(x, params):
    """Reference that mirrors the kernel's bf16-input / f32-accumulate scheme."""
    w1, b1, w2, b2, w3, b3 = params
    bf16, f32 = jnp.bfloat16, jnp.float32
    h1 = jnp.dot(x.astype(bf16), w1.astype(bf16), preferred_element_type=f32)
    h1 = jnp.maximum(h1 + b1, 0.0)
    h2 = jnp.dot(h1.astype(bf16), w2.astype(bf16), preferred_element_type=f32)
    h2 = jnp.maximum(h2 + b2, 0.0)
    # fc3 in plain f32 elementwise (matches the kernel's VPU path).
    return jnp.sum(h2 * w3.reshape(1, H2), axis=-1, keepdims=True) + b3.reshape(1, OUT)


if __name__ == "__main__":
    key = jax.random.PRNGKey(0)
    kx, kp = jax.random.split(key)

    B = 8
    x = jax.random.normal(kx, (B, INPUT_SIZE), jnp.float32)
    params = init_params(kp)

    out = link_predictor_forward(x, params)
    out = jax.block_until_ready(out)

    ref = reference_forward(x, params)
    assert out.shape == (B, OUT), out.shape
    # bf16 matmul inputs => tiny drift vs the bf16-matched reference (accumulation order only).
    assert jnp.allclose(out, ref, atol=1e-3, rtol=1e-3), "mismatch vs reference"

    print("KERNEL_OK")
</pallas_src>

<mosaic_0001>
module attributes {stable_mosaic.version = 11 : i64} {
  func.func @_mlp_kernel(%arg0: i32, %arg1: memref<128x300xf32, #tpu.memory_space<vmem>>, %arg2: memref<300x128xbf16, #tpu.memory_space<vmem>>, %arg3: memref<1x128xf32, #tpu.memory_space<vmem>>, %arg4: memref<128x64xbf16, #tpu.memory_space<vmem>>, %arg5: memref<1x64xf32, #tpu.memory_space<vmem>>, %arg6: memref<1x64xf32, #tpu.memory_space<vmem>>, %arg7: memref<1x1xf32, #tpu.memory_space<vmem>>, %arg8: memref<1x128xf32, #tpu.memory_space<vmem>>) attributes {dimension_semantics = [#tpu.dimension_semantics<parallel>], iteration_bounds = array<i64: 1>, scalar_prefetch = 0 : i64, scratch_operands = 0 : i64, tpu.core_type = #tpu.core_type<tc>, window_params = [{transform_indices = @transform_0, window_bounds = array<i64: 128, 300>}, {pipeline_mode = #tpu.pipeline_mode<synchronous>, transform_indices = @transform_1, window_bounds = array<i64: 300, 128>}, {pipeline_mode = #tpu.pipeline_mode<synchronous>, transform_indices = @transform_2, window_bounds = array<i64: 1, 128>}, {pipeline_mode = #tpu.pipeline_mode<synchronous>, transform_indices = @transform_3, window_bounds = array<i64: 128, 64>}, {pipeline_mode = #tpu.pipeline_mode<synchronous>, transform_indices = @transform_4, window_bounds = array<i64: 1, 64>}, {pipeline_mode = #tpu.pipeline_mode<synchronous>, transform_indices = @transform_5, window_bounds = array<i64: 1, 64>}, {pipeline_mode = #tpu.pipeline_mode<synchronous>, transform_indices = @transform_6, window_bounds = array<i64: 1, 1>}, {transform_indices = @transform_7, window_bounds = array<i64: 1, 128>}]} {
    %c0 = arith.constant 0 : index
    %c0_0 = arith.constant 0 : index
    %0 = vector.load %arg1[%c0, %c0_0] : memref<128x300xf32, #tpu.memory_space<vmem>>, vector<128x300xf32>
    %1 = arith.truncf %0 : vector<128x300xf32> to vector<128x300xbf16>
    %c0_1 = arith.constant 0 : index
    %c0_2 = arith.constant 0 : index
    %2 = vector.load %arg2[%c0_1, %c0_2] : memref<300x128xbf16, #tpu.memory_space<vmem>>, vector<300x128xbf16>
    %cst = arith.constant dense<0.000000e+00> : vector<128x128xf32>
    %3 = tpu.matmul %1, %2, %cst {dimension_numbers = #tpu.dot_dimension_numbers<[1], [0], [0], [1], [0, 0, 1, 1], [], []>} : vector<128x300xbf16>, vector<300x128xbf16>, vector<128x128xf32> -> vector<128x128xf32>
    %c0_3 = arith.constant 0 : index
    %c0_4 = arith.constant 0 : index
    %4 = vector.load %arg3[%c0_3, %c0_4] : memref<1x128xf32, #tpu.memory_space<vmem>>, vector<1x128xf32>
    %5 = vector.broadcast %4 : vector<1x128xf32> to vector<128x128xf32>
    %6 = arith.addf %3, %5 : vector<128x128xf32>
    %cst_5 = arith.constant 0.000000e+00 : f32
    %7 = vector.broadcast %cst_5 : f32 to vector<128x128xf32>
    %8 = arith.maximumf %6, %7 : vector<128x128xf32>
    %9 = arith.truncf %8 : vector<128x128xf32> to vector<128x128xbf16>
    %c0_6 = arith.constant 0 : index
    %c0_7 = arith.constant 0 : index
    %10 = vector.load %arg4[%c0_6, %c0_7] : memref<128x64xbf16, #tpu.memory_space<vmem>>, vector<128x64xbf16>
    %cst_8 = arith.constant dense<0.000000e+00> : vector<128x64xf32>
    %11 = tpu.matmul %9, %10, %cst_8 {dimension_numbers = #tpu.dot_dimension_numbers<[1], [0], [0], [1], [0, 0, 1, 1], [], []>} : vector<128x128xbf16>, vector<128x64xbf16>, vector<128x64xf32> -> vector<128x64xf32>
    %c0_9 = arith.constant 0 : index
    %c0_10 = arith.constant 0 : index
    %12 = vector.load %arg5[%c0_9, %c0_10] : memref<1x64xf32, #tpu.memory_space<vmem>>, vector<1x64xf32>
    %13 = vector.broadcast %12 : vector<1x64xf32> to vector<128x64xf32>
    %14 = arith.addf %11, %13 : vector<128x64xf32>
    %cst_11 = arith.constant 0.000000e+00 : f32
    %15 = vector.broadcast %cst_11 : f32 to vector<128x64xf32>
    %16 = arith.maximumf %14, %15 : vector<128x64xf32>
    %c0_12 = arith.constant 0 : index
    %c0_13 = arith.constant 0 : index
    %17 = vector.load %arg6[%c0_12, %c0_13] : memref<1x64xf32, #tpu.memory_space<vmem>>, vector<1x64xf32>
    %18 = vector.broadcast %17 : vector<1x64xf32> to vector<128x64xf32>
    %19 = arith.mulf %16, %18 : vector<128x64xf32>
    %cst_14 = arith.constant dense<0.000000e+00> : vector<128xf32>
    %20 = vector.multi_reduction <add>, %19, %cst_14 [1] : vector<128x64xf32> to vector<128xf32>
    %21 = vector.shape_cast %20 : vector<128xf32> to vector<128x1xf32>
    %c0_15 = arith.constant 0 : index
    %c0_16 = arith.constant 0 : index
    %22 = vector.load %arg7[%c0_15, %c0_16] : memref<1x1xf32, #tpu.memory_space<vmem>>, vector<1x1xf32>
    %23 = vector.broadcast %22 : vector<1x1xf32> to vector<128x1xf32>
    %24 = arith.addf %21, %23 : vector<128x1xf32>
    %25 = tpu.transpose %24, [1, 0] : vector<128x1xf32> -> vector<1x128xf32>
    %c0_17 = arith.constant 0 : index
    %c0_18 = arith.constant 0 : index
    %26 = vector.load %arg8[%c0_17, %c0_18] : memref<1x128xf32, #tpu.memory_space<vmem>>, vector<1x128xf32>
    tpu.vector_store %arg8[%c0_17, %c0_18], %25 {strides = array<i32>} : memref<1x128xf32, #tpu.memory_space<vmem>>, vector<1x128xf32>,
    return
  }
  func.func @transform_0(%arg0: i32) -> (i32, i32) {
    %c0_i32 = arith.constant 0 : i32
    %c0_i32_0 = arith.constant 0 : i32
    return %arg0, %c0_i32 : i32, i32
  }
  func.func @transform_1(%arg0: i32) -> (i32, i32) {
    %c0_i32 = arith.constant 0 : i32
    %c0_i32_0 = arith.constant 0 : i32
    %c0_i32_1 = arith.constant 0 : i32
    return %c0_i32, %c0_i32_0 : i32, i32
  }
  func.func @transform_2(%arg0: i32) -> (i32, i32) {
    %c0_i32 = arith.constant 0 : i32
    %c0_i32_0 = arith.constant 0 : i32
    %c0_i32_1 = arith.constant 0 : i32
    return %c0_i32, %c0_i32_0 : i32, i32
  }
  func.func @transform_3(%arg0: i32) -> (i32, i32) {
    %c0_i32 = arith.constant 0 : i32
    %c0_i32_0 = arith.constant 0 : i32
    %c0_i32_1 = arith.constant 0 : i32
    return %c0_i32, %c0_i32_0 : i32, i32
  }
  func.func @transform_4(%arg0: i32) -> (i32, i32) {
    %c0_i32 = arith.constant 0 : i32
    %c0_i32_0 = arith.constant 0 : i32
    %c0_i32_1 = arith.constant 0 : i32
    return %c0_i32, %c0_i32_0 : i32, i32
  }
  func.func @transform_5(%arg0: i32) -> (i32, i32) {
    %c0_i32 = arith.constant 0 : i32
    %c0_i32_0 = arith.constant 0 : i32
    %c0_i32_1 = arith.constant 0 : i32
    return %c0_i32, %c0_i32_0 : i32, i32
  }
  func.func @transform_6(%arg0: i32) -> (i32, i32) {
    %c0_i32 = arith.constant 0 : i32
    %c0_i32_0 = arith.constant 0 : i32
    %c0_i32_1 = arith.constant 0 : i32
    return %c0_i32, %c0_i32_0 : i32, i32
  }
  func.func @transform_7(%arg0: i32) -> (i32, i32) {
    %c0_i32 = arith.constant 0 : i32
    %c0_i32_0 = arith.constant 0 : i32
    return %c0_i32, %arg0 : i32, i32
  }
}

</mosaic_0001>

<bundles_post_ra>
// kernel: link_predictor_forward.1
= control target key start
LH: loop header
LB: loop body
LE: loop exit
PB: predicated region body
PF: predicated region fallthrough
CT: control target
= control target key end

     0   :  { %vm284_vm0 = vcmask 1045504   ;;  %vm259_vm1 = vcmask 359424   ;;  %vm713_vm2 = vcmask 523264   ;;  %s1407_s1 = inlined_call_operand.vmem [shape: bf16[300,128], index: 1, kind: input, shape index: {}]   ;;  %s1408_s0 = inlined_call_operand.vmem [shape: f32[128,300], index: 0, kind: input, shape index: {}]   ;;  %s1409_s3 = inlined_call_operand.vmem [shape: bf16[128,64], index: 3, kind: input, shape index: {}]   ;;  %s1410_s2 = inlined_call_operand.vmem [shape: f32[1,128], index: 2, kind: input, shape index: {}]   ;;  %s1411_s6 = inlined_call_operand.<no memory space> [shape: f32[1,1], index: 6, kind: input, shape index: {}]   ;;  %s1412_s4 = inlined_call_operand.vmem [shape: f32[1,64], index: 4, kind: input, shape index: {}]   ;;  %s1413_s5 = inlined_call_operand.vmem [shape: f32[1,64], index: 5, kind: input, shape index: {}]   ;;  %s1414_s7 = inlined_call_operand.vmem [shape: f32[1,128], index: 7, kind: output, shape index: {}]  }
   0x1   :  { %v1007_v0 = vld [vmem:[%s1407_s1 + $0x40] sm:$0xff]   ;;  %v1009_v2 = vld [vmem:[%s1407_s1 + $0x48] sm:$0xff]   ;;  %v1011_v4 = vld [vmem:[%s1407_s1 + $0x50] sm:$0xff]  }
   0x2   :  { %v1008_v1 = vld [vmem:[%s1407_s1] sm:$0xff]   ;;  %861 = vmatprep.subr.bf16.mxu0 %v1007_v0  ;;  %v1010_v3 = vld [vmem:[%s1407_s1 + $0x8] sm:$0xff]   ;;  %v1012_v5 = vld [vmem:[%s1407_s1 + $0x10] sm:$0xff]  }
   0x3   :  { %862 = vmatpush3.bf16.msra.mxu0 %v1008_v1  ;;  %v1013_v6 = vld [vmem:[%s1407_s1 + $0x58] sm:$0xff]   ;;  %v1015_v8 = vld [vmem:[%s1407_s1 + $0x60] sm:$0xff]   ;;  %v1017_v11 = vld [vmem:[%s1407_s1 + $0x68] sm:$0xff]  }
   0x4   :  { %863 = vmatprep.subr.bf16.mxu0 %v1009_v2  ;;  %v1014_v7 = vld [vmem:[%s1407_s1 + $0x18] sm:$0xff]   ;;  %v1020_v9 = vld [vmem:[%s1407_s1 + $0x80] sm:$0xff]   ;;  %v1023_v12 = vld [vmem:[%s1407_s1 + $0x88] sm:$0xff]  }
   0x5   :  { %v1016_v10 = vld [vmem:[%s1407_s1 + $0x20] sm:$0xff]   ;;  %952 = vmatprep.subr.bf16.mxu1 %v1020_v9  ;;  %v1018_v13 = vld [vmem:[%s1407_s1 + $0x28] sm:$0xff]   ;;  %v1019_v16 = vld [vmem:[%s1407_s1 + $0x70] sm:$0xff]  }
   0x6   :  { %953 = vmatpush3.bf16.msra.mxu1 %v1020_v9  ;;  %v30_v14 = vld [vmem:[%s1408_s0 + $0x8] sm:$0xff]  ;;  %v33_v15 = vld [vmem:[%s1408_s0 + $0x20] sm:$0xff]  ;;  %v1025_v18 = vld [vmem:[%s1407_s1 + $0x90] sm:$0x3f]  }
   0x7   :  { %864 = vmatpush3.bf16.msra.mxu0 %v1010_v3  ;;  %954 = vmatprep.subr.bf16.mxu1 %v1023_v12  ;;  %v78_v17 = vpack.c.bf16 %v33_v15, %v30_v14  ;;  %v31_v19 = vld [vmem:[%s1408_s0 + $0x10] sm:$0xff]  ;;  %v34_v20 = vld [vmem:[%s1408_s0 + $0x28] sm:$0xff]  ;;  %v37_v22 = vld [vmem:[%s1408_s0 + $0x40] sm:$0xff]  ;;  %v286_v24 = vsel %vm284_vm0, %v1025_v18, 0 }
   0x8   :  { %865 = vmatprep.subr.bf16.mxu0 %v1011_v4  ;;  %v79_v21 = vpack.c.bf16 %v34_v20, %v31_v19  ;;  %v40_v23 = vld [vmem:[%s1408_s0 + $0x58] sm:$0xff]  ;;  %v1021_v25 = vld [vmem:[%s1407_s1 + $0x30] sm:$0xff]   ;;  %v46_v29 = vld [vmem:[%s1408_s0 + $0x88] sm:$0xff] }
   0x9   :  { %320 = vmatprep.mubr.bf16.mxu0 %v78_v17  ;;  %v82_v26 = vpack.c.bf16 %v40_v23, %v37_v22  ;;  %v1022_v27 = vld [vmem:[%s1407_s1 + $0x78] sm:$0xff]   ;;  %v43_v28 = vld [vmem:[%s1408_s0 + $0x70] sm:$0xff]  ;;  %v29_v32 = vld [vmem:[%s1408_s0] sm:$0xff] }
   0xa   :  { %955 = vmatpush3.bf16.msra.mxu1 %v1023_v12  ;;  %958 = vmatprep.mubr.msk.bf16.mxu1 %vm259_vm1, %v79_v21  ;;  %v85_v30 = vpack.c.bf16 %v46_v29, %v43_v28  ;;  %v1024_v31 = vld [vmem:[%s1407_s1 + $0x38] sm:$0xff]   ;;  %v39_v35 = vld [vmem:[%s1408_s0 + $0x50] sm:$0xff]  ;;  %v49_v36 = vld [vmem:[%s1408_s0 + $0xa0] sm:$0xff] }
   0xb   :  { %866 = vmatpush3.bf16.msra.mxu0 %v1012_v5  ;;  %1006 = vmatprep.subr.msk.bf16.mxu1 %vm284_vm0, %v1025_v18  ;;  %v32_v33 = vld [vmem:[%s1408_s0 + $0x18] sm:$0xff]  ;;  %v55_v38 = vld [vmem:[%s1408_s0 + $0xd0] sm:$0xff]  ;;  %v58_v39 = vld [vmem:[%s1408_s0 + $0xe8] sm:$0xff] }
   0xc   :  { %867 = vmatprep.subr.bf16.mxu0 %v1013_v6  ;;  %v36_v34 = vld [vmem:[%s1408_s0 + $0x38] sm:$0xff]  ;;  %v77_v40 = vpack.c.bf16 %v32_v33, %v29_v32  ;;  %v91_v43 = vpack.c.bf16 %v58_v39, %v55_v38  ;;  %v35_v44 = vld [vmem:[%s1408_s0 + $0x30] sm:$0xff]  ;;  %v38_v45 = vld [vmem:[%s1408_s0 + $0x48] sm:$0xff] }
   0xd   :  { %v52_v37 = vld [vmem:[%s1408_s0 + $0xb8] sm:$0xff]  ;;  %v81_v41 = vpack.c.bf16 %v39_v35, %v36_v34  ;;  %v42_v46 = vld [vmem:[%s1408_s0 + $0x68] sm:$0xff]  ;;  %v45_v47 = vld [vmem:[%s1408_s0 + $0x80] sm:$0xff]  ;;  %v80_v54 = vpack.c.bf16 %v38_v45, %v35_v44 }
   0xe   :  { %957 = vmatpush3.bf16.msra.mxu1 %v286_v24  ;;  %v88_v42 = vpack.c.bf16 %v52_v37, %v49_v36  ;;  %v61_v48 = vld [vmem:[%s1408_s0 + $0x100] sm:$0xff]  ;;  %v64_v49 = vld [vmem:[%s1408_s0 + $0x118] sm:$0xff]  ;;  %v67_v50 = vld [vmem:[%s1408_s0 + $0x130] sm:$0xff]  ;;  %v84_v56 = vpack.c.bf16 %v45_v47, %v42_v46 }
   0xf   :  { %868 = vmatpush3.bf16.msra.mxu0 %v1014_v7  ;;  %v1026_v51 = vld [vmem:[%s1409_s3] sm:$0xff]   ;;  %v1027_v52 = vld [vmem:[%s1409_s3 + $0x8] sm:$0xff]   ;;  %v1028_v55 = vld [vmem:[%s1409_s3 + $0x10] sm:$0xff]   ;;  %v94_v57 = vpack.c.bf16 %v64_v49, %v61_v48 }
  0x10   :  { %869 = vmatprep.subr.bf16.mxu0 %v1015_v8  ;;  %v70_v53 = vld [vmem:[%s1408_s0 + $0x148] sm:$0xff]  ;;  %974 = vmatprep.subr.bf16.mxu1 %v1026_v51  ;;  %v41_v59 = vld [vmem:[%s1408_s0 + $0x60] sm:$0xff]  ;;  %v44_v60 = vld [vmem:[%s1408_s0 + $0x78] sm:$0xff] }
  0x11   :  { %959 = vmatmul.mubr.msk.bf16.vlgmr.msra.gmra.mrb[0].mxu1 %vm259_vm1, %v82_v26  ;;  %v97_v58 = vpack.c.bf16 %v70_v53, %v67_v50  ;;  %v48_v61 = vld [vmem:[%s1408_s0 + $0x98] sm:$0xff]  ;;  %v51_v62 = vld [vmem:[%s1408_s0 + $0xb0] sm:$0xff]  ;;  %v73_v63 = vld [vmem:[%s1408_s0 + $0x160] sm:$0xff]  ;;  %v83_v1 = vpack.c.bf16 %v44_v60, %v41_v59 }
  0x12   :  { %962 = vmatprep.mubr.msk.bf16.mxu1 %vm259_vm1, %v85_v30  ;;  %975 = vmatpush3.bf16.msra.mxu1 %v1026_v51  ;;  %v76_v0 = vld [vmem:[%s1408_s0 + $0x178] sm:$0xff]  ;;  %v87_v2 = vpack.c.bf16 %v51_v62, %v48_v61  ;;  %v47_v4 = vld [vmem:[%s1408_s0 + $0x90] sm:$0xff]  ;;  %v50_v5 = vld [vmem:[%s1408_s0 + $0xa8] sm:$0xff] }
  0x13   :  { %870 = vmatpush3.bf16.msra.mxu0 %v1016_v10  ;;  %976 = vmatprep.subr.bf16.mxu1 %v1027_v52  ;;  %v100_v3 = vpack.c.bf16 %v76_v0, %v73_v63  ;;  %v54_v6 = vld [vmem:[%s1408_s0 + $0xc8] sm:$0xff]  ;;  %v57_v7 = vld [vmem:[%s1408_s0 + $0xe0] sm:$0xff]  ;;  %v86_v8 = vpack.c.bf16 %v50_v5, %v47_v4  ;;  %v60_v12 = vld [vmem:[%s1408_s0 + $0xf8] sm:$0xff] }
  0x14   :  { %871 = vmatprep.subr.bf16.mxu0 %v1017_v11  ;;  %v90_v9 = vpack.c.bf16 %v57_v7, %v54_v6  ;;  %v53_v10 = vld [vmem:[%s1408_s0 + $0xc0] sm:$0xff]  ;;  %v56_v11 = vld [vmem:[%s1408_s0 + $0xd8] sm:$0xff]  ;;  %v62_v17 = vld [vmem:[%s1408_s0 + $0x108] sm:$0xff] }
  0x15   :  { %v89_v14 = vpack.c.bf16 %v56_v11, %v53_v10  ;;  %v66_v18 = vld [vmem:[%s1408_s0 + $0x128] sm:$0xff]  ;;  %v69_v19 = vld [vmem:[%s1408_s0 + $0x140] sm:$0xff]  ;;  %v68_v23 = vld [vmem:[%s1408_s0 + $0x138] sm:$0xff] }
  0x16   :  { %977 = vmatpush3.bf16.msra.mxu1 %v1027_v52  ;;  %v96_v21 = vpack.c.bf16 %v69_v19, %v66_v18  ;;  %v65_v22 = vld [vmem:[%s1408_s0 + $0x120] sm:$0xff]  ;;  %v72_v24 = vld [vmem:[%s1408_s0 + $0x158] sm:$0xff]  ;;  %v71_v28 = vld [vmem:[%s1408_s0 + $0x150] sm:$0xff] }
  0x17   :  { %872 = vmatpush3.bf16.msra.mxu0 %v1018_v13  ;;  %978 = vmatprep.subr.bf16.mxu1 %v1028_v55  ;;  %v63_v13 = vld [vmem:[%s1408_s0 + $0x110] sm:$0xff]  ;;  %v95_v26 = vpack.c.bf16 %v68_v23, %v65_v22  ;;  %v74_v29 = vld [vmem:[%s1408_s0 + $0x168] sm:$0xff]  ;;  %v1030_v32 = vld [vmem:[%s1409_s3 + $0x20] sm:$0xff]  }
  0x18   :  { %873 = vmatprep.subr.bf16.mxu0 %v1019_v16  ;;  %v93_v15 = vpack.c.bf16 %v63_v13, %v60_v12  ;;  %v59_v16 = vld [vmem:[%s1408_s0 + $0xf0] sm:$0xff]  ;;  %v98_v30 = vpack.c.bf16 %v74_v29, %v71_v28  ;;  %v1031_v33 = vld [vmem:[%s1409_s3 + $0x28] sm:$0xff]   ;;  %v1033_v35 = vld [vmem:[%s1409_s3 + $0x38] sm:$0xff]  }
  0x19   :  { %963 = vmatmul.mubr.msk.bf16.gmra.mrb[4].mxu1 %vm259_vm1, %v88_v42  ;;  %v92_v20 = vpack.c.bf16 %v62_v17, %v59_v16  ;;  %v1032_v34 = vld [vmem:[%s1409_s3 + $0x30] sm:$0xff]   ;;  %v1310_v42 = vld [vmem:[%s1410_s2] ss:$0 sm:$0xff] }
  0x1a   :  { %966 = vmatprep.mubr.msk.bf16.mxu1 %vm259_vm1, %v91_v43  ;;  %979 = vmatpush3.bf16.msra.mxu1 %v1028_v55 }
  0x1b   :  { %874 = vmatpush3.bf16.msra.mxu0 %v1021_v25  ;;  %v75_v25 = vld [vmem:[%s1408_s0 + $0x170] sm:$0xff] }
  0x1c   :  { %875 = vmatprep.subr.bf16.mxu0 %v1022_v27  ;;  %v99_v27 = vpack.c.bf16 %v75_v25, %v72_v24 }
  0x1f   :  { %876 = vmatpush3.bf16.msra.mxu0 %v1024_v31  ;;  %v1029_v31 = vld [vmem:[%s1409_s3 + $0x18] sm:$0xff]  }
  0x20   :  { %980 = vmatprep.subr.bf16.mxu1 %v1029_v31 }
  0x21   :  { %967 = vmatmul.mubr.msk.bf16.gmra.mrb[8].mxu1 %vm259_vm1, %v94_v57 }
  0x22   :  { %321 = vmatmul.mubr.bf16.vlgmr.msra.gmra.mrb[0].mxu0 %v77_v40  ;;  %970 = vmatprep.mubr.msk.bf16.mxu1 %vm259_vm1, %v97_v58 }
  0x23   :  { %328 = vmatprep.mubr.bf16.mxu0 %v81_v41  ;;  %981 = vmatpush3.bf16.msra.mxu1 %v1029_v31 }
  0x24   :  { %982 = vmatprep.subr.bf16.mxu1 %v1030_v32 }
  0x27   :  { %983 = vmatpush3.bf16.msra.mxu1 %v1030_v32 }
  0x28   :  { %984 = vmatprep.subr.bf16.mxu1 %v1031_v33 }
  0x29   :  { %971 = vmatmul.mubr.msk.bf16.gmra.mrb[12].mxu1 %vm259_vm1, %v100_v3 }
  0x2a   :  { %329 = vmatmul.mubr.bf16.gmra.mrb[4].mxu0 %v80_v54 }
  0x2b   :  { %336 = vmatprep.mubr.bf16.mxu0 %v84_v56  ;;  %985 = vmatpush3.bf16.msra.mxu1 %v1031_v33 }
  0x2c   :  { %986 = vmatprep.subr.bf16.mxu1 %v1032_v34 }
  0x2f   :  { %987 = vmatpush3.bf16.msra.mxu1 %v1032_v34 }
  0x30   :  { %988 = vmatprep.subr.bf16.mxu1 %v1033_v35 }
  0x32   :  { %337 = vmatmul.mubr.bf16.gmra.mrb[8].mxu0 %v83_v1 }
  0x33   :  { %344 = vmatprep.mubr.bf16.mxu0 %v87_v2  ;;  %989 = vmatpush3.bf16.msra.mxu1 %v1033_v35 }
  0x3a   :  { %345 = vmatmul.mubr.bf16.gmra.mrb[12].mxu0 %v86_v8 }
  0x3b   :  { %352 = vmatprep.mubr.bf16.mxu0 %v90_v9 }
  0x42   :  { %353 = vmatmul.mubr.bf16.gmra.mrb[16].mxu0 %v89_v14 }
  0x43   :  { %360 = vmatprep.mubr.bf16.mxu0 %v93_v15 }
  0x4a   :  { %361 = vmatmul.mubr.bf16.gmra.mrb[20].mxu0 %v92_v20 }
  0x4b   :  { %368 = vmatprep.mubr.bf16.mxu0 %v96_v21 }
  0x52   :  { %369 = vmatmul.mubr.bf16.gmra.mrb[24].mxu0 %v95_v26 }
  0x53   :  { %376 = vmatprep.mubr.bf16.mxu0 %v99_v27 }
  0x5a   :  { %377 = vmatmul.mubr.bf16.gmra.mrb[28].mxu0 %v98_v30 }
  0xe4   :  { %v960_v36 = vpop.f32.mrb[0].mxu1 }
  0xe5   :  { %v419_v37 = vpop.f32.mrb[1].mxu1 }
  0xe6   :  { %v961_v38 = vpop.f32.mrb[2].mxu1 }
  0xe7   :  { %v422_v39 = vpop.f32.mrb[3].mxu1 }
  0xec   :  { %v964_v43 = vpop.f32.mrb[4].mxu1 }
  0xed   :  { %v435_v46 = vpop.f32.mrb[5].mxu1 }
  0xee   :  { %v965_v48 = vpop.f32.mrb[6].mxu1 }
  0xef   :  { %v438_v51 = vpop.f32.mrb[7].mxu1 }
  0xf4   :  { %v1314_v57 = vpop.f32.mrb[8].mxu1 }
  0xf5   :  { %v877_v40 = vpop.f32.mrb[0].mxu0  ;;  %v451_v62 = vpop.f32.mrb[9].mxu1 }
  0xf6   :  { %v878_v41 = vpop.f32.mrb[1].mxu0  ;;  %v1316_v0 = vpop.f32.mrb[10].mxu1 }
  0xf7   :  { %v879_v44 = vadd.f32 %v878_v41, %v877_v40  ;;  %v880_v45 = vpop.f32.mrb[2].mxu0  ;;  %v454_v4 = vpop.f32.mrb[11].mxu1 }
  0xf8   :  { %v881_v47 = vpop.f32.mrb[3].mxu0 }
  0xf9   :  { %v882_v49 = vadd.f32 %v881_v47, %v880_v45  ;;  %v323_v50 = vadd.f32 %v879_v44, %v1310_v42 }
  0xfb   :  { %v420_v52 = vadd.f32 %v419_v37, %v323_v50  ;;  %v326_v53 = vadd.f32 %v882_v49, %v1310_v42 }
  0xfc   :  { %v1320_v10 = vpop.f32.mrb[12].mxu1 }
  0xfd   :  { %v423_v54 = vadd.f32 %v422_v39, %v326_v53  ;;  %v883_v55 = vpop.f32.mrb[4].mxu0  ;;  %v482_v58 = vmax.f32 %v420_v52, 0.0  ;;  %v1322_v15 = vpop.f32.mrb[13].mxu1 }
  0xfe   :  { %v884_v56 = vpop.f32.mrb[5].mxu0  ;;  %v1324_v17 = vpop.f32.mrb[14].mxu1 }
  0xff   :  { %v483_v59 = vmax.f32 %v423_v54, 0.0  ;;  %v885_v60 = vadd.f32 %v884_v56, %v883_v55  ;;  %v886_v61 = vpop.f32.mrb[6].mxu0  ;;  %v470_v21 = vpop.f32.mrb[15].mxu1 }
 0x100   :  { %v887_v63 = vpop.f32.mrb[7].mxu0 }
 0x101   :  { %v498_v1 = vpack.c.bf16 %v483_v59, %v482_v58  ;;  %v331_v2 = vadd.f32 %v885_v60, %v1310_v42  ;;  %v888_v3 = vadd.f32 %v887_v63, %v886_v61 }
 0x103   :  { %v428_v5 = vadd.f32 %v960_v36, %v331_v2  ;;  %v334_v6 = vadd.f32 %v888_v3, %v1310_v42  ;;  %990 = vmatprep.mubr.bf16.mxu1 %v498_v1 }
 0x105   :  { %v431_v7 = vadd.f32 %v961_v38, %v334_v6  ;;  %v889_v8 = vpop.f32.mrb[8].mxu0  ;;  %v484_v11 = vmax.f32 %v428_v5, 0.0 }
 0x106   :  { %v890_v9 = vpop.f32.mrb[9].mxu0 }
 0x107   :  { %v485_v12 = vmax.f32 %v431_v7, 0.0  ;;  %v891_v13 = vadd.f32 %v890_v9, %v889_v8  ;;  %v892_v14 = vpop.f32.mrb[10].mxu0 }
 0x108   :  { %v893_v16 = vpop.f32.mrb[11].mxu0 }
 0x109   :  { %v499_v18 = vpack.c.bf16 %v485_v12, %v484_v11  ;;  %v894_v19 = vadd.f32 %v893_v16, %v892_v14  ;;  %v339_v20 = vadd.f32 %v891_v13, %v1310_v42 }
 0x10b   :  { %v436_v22 = vadd.f32 %v435_v46, %v339_v20  ;;  %991 = vmatmul.mubr.bf16.vlgmr.msra.gmra.mrb[16].mxu1 %v499_v18  ;;  %v342_v23 = vadd.f32 %v894_v19, %v1310_v42 }
 0x10d   :  { %v439_v24 = vadd.f32 %v438_v51, %v342_v23  ;;  %v895_v25 = vpop.f32.mrb[12].mxu0  ;;  %v486_v27 = vmax.f32 %v436_v22, 0.0 }
 0x10e   :  { %v896_v26 = vpop.f32.mrb[13].mxu0 }
 0x10f   :  { %v487_v28 = vmax.f32 %v439_v24, 0.0  ;;  %v897_v29 = vadd.f32 %v896_v26, %v895_v25  ;;  %v898_v30 = vpop.f32.mrb[14].mxu0 }
 0x110   :  { %v899_v31 = vpop.f32.mrb[15].mxu0 }
 0x111   :  { %v500_v32 = vpack.c.bf16 %v487_v28, %v486_v27  ;;  %v347_v33 = vadd.f32 %v897_v29, %v1310_v42  ;;  %v900_v34 = vadd.f32 %v899_v31, %v898_v30 }
 0x113   :  { %v444_v35 = vadd.f32 %v964_v43, %v347_v33  ;;  %v350_v36 = vadd.f32 %v900_v34, %v1310_v42  ;;  %994 = vmatprep.mubr.bf16.mxu1 %v500_v32  ;;  %v12_v32 = vstv %s1411_s6  ;;  %v1349_v33 = vld [vmem:[%s1412_s4] ss:$0 sm:$0xff] }
 0x114   :  { %13 = vst [vmem:[#allocation2] sm:$0x1] %v12_v32 }
 0x115   :  { %v447_v37 = vadd.f32 %v965_v48, %v350_v36  ;;  %v901_v38 = vpop.f32.mrb[16].mxu0  ;;  %v488_v40 = vmax.f32 %v444_v35, 0.0  ;;  %v1356_v36 = vld [vmem:[%s1413_s5] ss:$0 sm:$0xff] }
 0x116   :  { %v902_v39 = vpop.f32.mrb[17].mxu0 }
 0x117   :  { %v489_v41 = vmax.f32 %v447_v37, 0.0  ;;  %v903_v44 = vadd.f32 %v902_v39, %v901_v38  ;;  %v904_v45 = vpop.f32.mrb[18].mxu0 }
 0x118   :  { %v905_v46 = vpop.f32.mrb[19].mxu0 }
 0x119   :  { %v906_v47 = vadd.f32 %v905_v46, %v904_v45  ;;  %v355_v49 = vadd.f32 %v903_v44, %v1310_v42  ;;  %v501_v50 = vpack.c.bf16 %v489_v41, %v488_v40 }
 0x11b   :  { %v452_v51 = vadd.f32 %v451_v62, %v355_v49  ;;  %995 = vmatmul.mubr.bf16.gmra.mrb[20].mxu1 %v501_v50  ;;  %v358_v52 = vadd.f32 %v906_v47, %v1310_v42 }
 0x11d   :  { %v455_v43 = vadd.f32 %v454_v4, %v358_v52  ;;  %v907_v53 = vpop.f32.mrb[20].mxu0  ;;  %v490_v55 = vmax.f32 %v452_v51, 0.0 }
 0x11e   :  { %v908_v54 = vpop.f32.mrb[21].mxu0 }
 0x11f   :  { %v491_v48 = vmax.f32 %v455_v43, 0.0  ;;  %v909_v56 = vadd.f32 %v908_v54, %v907_v53  ;;  %v910_v58 = vpop.f32.mrb[22].mxu0 }
 0x120   :  { %v911_v59 = vpop.f32.mrb[23].mxu0 }
 0x121   :  { %v502_v60 = vpack.c.bf16 %v491_v48, %v490_v55  ;;  %v363_v61 = vadd.f32 %v909_v56, %v1310_v42  ;;  %v912_v63 = vadd.f32 %v911_v59, %v910_v58 }
 0x123   :  { %v460_v1 = vadd.f32 %v1314_v57, %v363_v61  ;;  %v366_v2 = vadd.f32 %v912_v63, %v1310_v42  ;;  %998 = vmatprep.mubr.bf16.mxu1 %v502_v60 }
 0x125   :  { %v463_v62 = vadd.f32 %v1316_v0, %v366_v2  ;;  %v913_v3 = vpop.f32.mrb[24].mxu0  ;;  %v492_v5 = vmax.f32 %v460_v1, 0.0 }
 0x126   :  { %v914_v4 = vpop.f32.mrb[25].mxu0 }
 0x127   :  { %v493_v6 = vmax.f32 %v463_v62, 0.0  ;;  %v915_v7 = vadd.f32 %v914_v4, %v913_v3  ;;  %v916_v8 = vpop.f32.mrb[26].mxu0 }
 0x128   :  { %v917_v9 = vpop.f32.mrb[27].mxu0 }
 0x129   :  { %v918_v11 = vadd.f32 %v917_v9, %v916_v8  ;;  %v371_v12 = vadd.f32 %v915_v7, %v1310_v42  ;;  %v503_v13 = vpack.c.bf16 %v493_v6, %v492_v5 }
 0x12b   :  { %v468_v14 = vadd.f32 %v1322_v15, %v371_v12  ;;  %999 = vmatmul.mubr.bf16.gmra.mrb[24].mxu1 %v503_v13  ;;  %v374_v57 = vadd.f32 %v918_v11, %v1310_v42 }
 0x12d   :  { %v471_v16 = vadd.f32 %v470_v21, %v374_v57  ;;  %v919_v18 = vpop.f32.mrb[28].mxu0  ;;  %v494_v0 = vmax.f32 %v468_v14, 0.0 }
 0x12e   :  { %v920_v19 = vpop.f32.mrb[29].mxu0 }
 0x12f   :  { %v495_v20 = vmax.f32 %v471_v16, 0.0  ;;  %v921_v22 = vadd.f32 %v920_v19, %v919_v18  ;;  %v922_v23 = vpop.f32.mrb[30].mxu0 }
 0x130   :  { %v923_v24 = vpop.f32.mrb[31].mxu0 }
 0x131   :  { %v504_v25 = vpack.c.bf16 %v495_v20, %v494_v0  ;;  %v379_v26 = vadd.f32 %v921_v22, %v1310_v42  ;;  %v924_v27 = vadd.f32 %v923_v24, %v922_v23 }
 0x133   :  { %v476_v28 = vadd.f32 %v1320_v10, %v379_v26  ;;  %v382_v29 = vadd.f32 %v924_v27, %v1310_v42  ;;  %1002 = vmatprep.mubr.bf16.mxu1 %v504_v25 }
 0x135   :  { %v479_v15 = vadd.f32 %v1324_v17, %v382_v29  ;;  %v496_v30 = vmax.f32 %v476_v28, 0.0 }
 0x137   :  { %v497_v21 = vmax.f32 %v479_v15, 0.0 }
 0x139   :  { %v505_v31 = vpack.c.bf16 %v497_v21, %v496_v30 }
 0x13b   :  { %1003 = vmatmul.mubr.bf16.gmra.mrb[28].mxu1 %v505_v31 }
 0x1de   :  { %v992_v10 = vpop.f32.mrb[16].mxu1 }
 0x1df   :  { %v620_v42 = vadd.f32 %v992_v10, %v1349_v33  ;;  %v611_v34 = vpop.f32.mrb[17].mxu1 }
 0x1e0   :  { %v612_v17 = vadd.f32 %v1349_v33, %v611_v34  ;;  %v993_v35 = vpop.f32.mrb[18].mxu1 }
 0x1e1   :  { %v676_v37 = vmax.f32 %v620_v42, 0.0  ;;  %v623_v38 = vadd.f32 %v993_v35, %v1349_v33  ;;  %v614_v39 = vpop.f32.mrb[19].mxu1 }
 0x1e2   :  { %v674_v40 = vmax.f32 %v612_v17, 0.0  ;;  %v615_v41 = vadd.f32 %v1349_v33, %v614_v39 }
 0x1e3   :  { %v677_v44 = vmax.f32 %v623_v38, 0.0  ;;  %v699_v45 = vmul.f32 %v1356_v36, %v676_v37 }
 0x1e4   :  { %v675_v46 = vmax.f32 %v615_v41, 0.0  ;;  %v697_v47 = vmul.f32 %v1356_v36, %v674_v40 }
 0x1e5   :  { %v720_v49 = vsel %vm713_vm2, %v699_v45, 0.0  ;;  %v700_v50 = vmul.f32 %v1356_v36, %v677_v44 }
 0x1e6   :  { %721 = vadd.xlane.f32.xlu1 %v720_v49  ;;  %v714_v51 = vsel %vm713_vm2, %v697_v47, 0.0  ;;  %v698_v52 = vmul.f32 %v1356_v36, %v675_v46 }
 0x1e7   :  { %715 = vadd.xlane.f32.xlu0 %v714_v51  ;;  %v723_v43 = vsel %vm713_vm2, %v700_v50, 0.0 }
 0x1e8   :  { %v717_v53 = vsel %vm713_vm2, %v698_v52, 0.0  ;;  %v860_v52 = vld [vmem:[#allocation2] ss:$0 sm:$0xff] }
 0x1ea   :  { %724 = vadd.xlane.f32.xlu1 %v723_v43 }
 0x1eb   :  { %718 = vadd.xlane.f32.xlu0 %v717_v53 }
 0x1ee   :  { %v996_v54 = vpop.f32.mrb[20].mxu1 }
 0x1ef   :  { %v636_v55 = vadd.f32 %v996_v54, %v1349_v33  ;;  %v627_v48 = vpop.f32.mrb[21].mxu1 }
 0x1f0   :  { %v628_v56 = vadd.f32 %v1349_v33, %v627_v48  ;;  %v997_v58 = vpop.f32.mrb[22].mxu1 }
 0x1f1   :  { %v680_v59 = vmax.f32 %v636_v55, 0.0  ;;  %v639_v60 = vadd.f32 %v997_v58, %v1349_v33  ;;  %v630_v61 = vpop.f32.mrb[23].mxu1 }
 0x1f2   :  { %v678_v63 = vmax.f32 %v628_v56, 0.0  ;;  %v631_v1 = vadd.f32 %v1349_v33, %v630_v61 }
 0x1f3   :  { %v703_v2 = vmul.f32 %v1356_v36, %v680_v59  ;;  %v681_v62 = vmax.f32 %v639_v60, 0.0 }
 0x1f4   :  { %v679_v3 = vmax.f32 %v631_v1, 0.0  ;;  %v701_v5 = vmul.f32 %v1356_v36, %v678_v63 }
 0x1f5   :  { %v732_v4 = vsel %vm713_vm2, %v703_v2, 0.0  ;;  %v704_v8 = vmul.f32 %v1356_v36, %v681_v62 }
 0x1f6   :  { %733 = vadd.xlane.f32.xlu0 %v732_v4  ;;  %v702_v6 = vmul.f32 %v1356_v36, %v679_v3  ;;  %v726_v9 = vsel %vm713_vm2, %v701_v5, 0.0 }
 0x1f7   :  { %v735_v11 = vsel %vm713_vm2, %v704_v8, 0.0 }
 0x1f8   :  { %v729_v7 = vsel %vm713_vm2, %v702_v6, 0.0 }
 0x1f9   :  { %730 = vadd.xlane.f32.xlu1 %v729_v7 }
 0x1fa   :  { %727 = vadd.xlane.f32.xlu0 %v726_v9 }
 0x1fd   :  { %736 = vadd.xlane.f32.xlu1 %v735_v11 }
 0x1fe   :  { %v1000_v12 = vpop.f32.mrb[24].mxu1 }
 0x1ff   :  { %v652_v13 = vadd.f32 %v1000_v12, %v1349_v33  ;;  %v643_v14 = vpop.f32.mrb[25].mxu1 }
 0x200   :  { %v644_v57 = vadd.f32 %v1349_v33, %v643_v14  ;;  %v1001_v16 = vpop.f32.mrb[26].mxu1 }
 0x201   :  { %v684_v18 = vmax.f32 %v652_v13, 0.0  ;;  %v655_v19 = vadd.f32 %v1001_v16, %v1349_v33  ;;  %v646_v0 = vpop.f32.mrb[27].mxu1 }
 0x202   :  { %v682_v20 = vmax.f32 %v644_v57, 0.0  ;;  %v647_v22 = vadd.f32 %v1349_v33, %v646_v0 }
 0x203   :  { %v707_v23 = vmul.f32 %v1356_v36, %v684_v18  ;;  %v685_v24 = vmax.f32 %v655_v19, 0.0 }
 0x204   :  { %v683_v25 = vmax.f32 %v647_v22, 0.0  ;;  %v705_v27 = vmul.f32 %v1356_v36, %v682_v20 }
 0x205   :  { %v744_v26 = vsel %vm713_vm2, %v707_v23, 0.0  ;;  %v708_v15 = vmul.f32 %v1356_v36, %v685_v24 }
 0x206   :  { %745 = vadd.xlane.f32.xlu0 %v744_v26  ;;  %v706_v28 = vmul.f32 %v1356_v36, %v683_v25  ;;  %v738_v30 = vsel %vm713_vm2, %v705_v27, 0.0 }
 0x207   :  { %v747_v21 = vsel %vm713_vm2, %v708_v15, 0.0 }
 0x208   :  { %v741_v29 = vsel %vm713_vm2, %v706_v28, 0.0 }
 0x209   :  { %742 = vadd.xlane.f32.xlu1 %v741_v29 }
 0x20a   :  { %739 = vadd.xlane.f32.xlu0 %v738_v30 }
 0x20d   :  { %748 = vadd.xlane.f32.xlu1 %v747_v21 }
 0x20e   :  { %v1004_v31 = vpop.f32.mrb[28].mxu1 }
 0x20f   :  { %v668_v32 = vadd.f32 %v1004_v31, %v1349_v33  ;;  %v659_v10 = vpop.f32.mrb[29].mxu1 }
 0x210   :  { %v660_v42 = vadd.f32 %v1349_v33, %v659_v10  ;;  %v1005_v34 = vpop.f32.mrb[30].mxu1 }
 0x211   :  { %v688_v17 = vmax.f32 %v668_v32, 0.0  ;;  %v671_v35 = vadd.f32 %v1005_v34, %v1349_v33  ;;  %v662_v37 = vpop.f32.mrb[31].mxu1 }
 0x212   :  { %v686_v38 = vmax.f32 %v660_v42, 0.0  ;;  %v663_v39 = vadd.f32 %v1349_v33, %v662_v37 }
 0x213   :  { %v711_v40 = vmul.f32 %v1356_v36, %v688_v17  ;;  %v689_v41 = vmax.f32 %v671_v35, 0.0 }
 0x214   :  { %v687_v44 = vmax.f32 %v663_v39, 0.0  ;;  %v709_v46 = vmul.f32 %v1356_v36, %v686_v38 }
 0x215   :  { %v756_v45 = vsel %vm713_vm2, %v711_v40, 0.0  ;;  %v712_v50 = vmul.f32 %v1356_v36, %v689_v41 }
 0x216   :  { %757 = vadd.xlane.f32.xlu0 %v756_v45  ;;  %v710_v47 = vmul.f32 %v1356_v36, %v687_v44  ;;  %v750_v51 = vsel %vm713_vm2, %v709_v46, 0.0 }
 0x217   :  { %v759_v33 = vsel %vm713_vm2, %v712_v50, 0.0 }
 0x218   :  { %v753_v49 = vsel %vm713_vm2, %v710_v47, 0.0 }
 0x219   :  { %754 = vadd.xlane.f32.xlu1 %v753_v49 }
 0x21a   :  { %751 = vadd.xlane.f32.xlu0 %v750_v51 }
 0x21d   :  { %760 = vadd.xlane.f32.xlu1 %v759_v33 }
 0x273   :  { %v722_v54 = vpop.xlane.xlu1 %721 }
 0x274   :  { %v716_v43 = vpop.xlane.xlu0 %715  ;;  %v771_v56 = vadd.f32 %v860_v52, %v722_v54 }
 0x275   :  { %v769_v53 = vadd.f32 %v860_v52, %v716_v43 }
 0x277   :  { %785 = vxpose.xlu0.b32.start [1/16] (narrow) %v769_v53, 8  ;;  %v725_v58 = vpop.xlane.xlu1 %724 }
 0x278   :  { %v719_v55 = vpop.xlane.xlu0 %718  ;;  %v772_v59 = vadd.f32 %v860_v52, %v725_v58 }
 0x279   :  { %v770_v48 = vadd.f32 %v860_v52, %v719_v55 }
 0x27b   :  { %786 = vxpose.xlu0.b32.cont [2/16] (narrow) %v770_v48, 8 }
 0x27f   :  { %787 = vxpose.xlu0.b32.cont [3/16] (narrow) %v771_v56, 8 }
 0x283   :  { %788 = vxpose.xlu0.b32.cont [4/16] (narrow) %v772_v59, 8  ;;  %v734_v36 = vpop.xlane.xlu0 %733 }
 0x284   :  { %v775_v2 = vadd.f32 %v860_v52, %v734_v36 }
 0x286   :  { %v731_v63 = vpop.xlane.xlu1 %730 }
 0x287   :  { %v728_v60 = vpop.xlane.xlu0 %727  ;;  %v774_v1 = vadd.f32 %v860_v52, %v731_v63 }
 0x288   :  { %v773_v61 = vadd.f32 %v860_v52, %v728_v60 }
 0x28a   :  { %789 = vxpose.xlu0.b32.cont [5/16] (narrow) %v773_v61, 8  ;;  %v737_v62 = vpop.xlane.xlu1 %736 }
 0x28b   :  { %v776_v4 = vadd.f32 %v860_v52, %v737_v62 }
 0x28e   :  { %790 = vxpose.xlu0.b32.cont [6/16] (narrow) %v774_v1, 8 }
 0x292   :  { %791 = vxpose.xlu0.b32.cont [7/16] (narrow) %v775_v2, 8 }
 0x293   :  { %v746_v3 = vpop.xlane.xlu0 %745 }
 0x294   :  { %v779_v9 = vadd.f32 %v860_v52, %v746_v3 }
 0x296   :  { %792 = vxpose.xlu0.b32.cont [8/16] (narrow) %v776_v4, 8  ;;  %v743_v7 = vpop.xlane.xlu1 %742 }
 0x297   :  { %v740_v5 = vpop.xlane.xlu0 %739  ;;  %v778_v8 = vadd.f32 %v860_v52, %v743_v7 }
 0x298   :  { %v777_v6 = vadd.f32 %v860_v52, %v740_v5 }
 0x29a   :  { %793 = vxpose.xlu0.b32.cont [9/16] (narrow) %v777_v6, 8  ;;  %v749_v11 = vpop.xlane.xlu1 %748 }
 0x29b   :  { %v780_v13 = vadd.f32 %v860_v52, %v749_v11 }
 0x29e   :  { %794 = vxpose.xlu0.b32.cont [10/16] (narrow) %v778_v8, 8 }
 0x2a2   :  { %795 = vxpose.xlu0.b32.cont [11/16] (narrow) %v779_v9, 8 }
 0x2a3   :  { %v758_v12 = vpop.xlane.xlu0 %757 }
 0x2a4   :  { %v783_v19 = vadd.f32 %v860_v52, %v758_v12 }
 0x2a6   :  { %796 = vxpose.xlu0.b32.cont [12/16] (narrow) %v780_v13, 8  ;;  %v755_v16 = vpop.xlane.xlu1 %754 }
 0x2a7   :  { %v752_v14 = vpop.xlane.xlu0 %751  ;;  %v782_v18 = vadd.f32 %v860_v52, %v755_v16 }
 0x2a8   :  { %v781_v57 = vadd.f32 %v860_v52, %v752_v14 }
 0x2aa   :  { %797 = vxpose.xlu0.b32.cont [13/16] (narrow) %v781_v57, 8  ;;  %v761_v0 = vpop.xlane.xlu1 %760 }
 0x2ab   :  { %v784_v20 = vadd.f32 %v860_v52, %v761_v0 }
 0x2ae   :  { %798 = vxpose.xlu0.b32.cont [14/16] (narrow) %v782_v18, 8 }
 0x2b2   :  { %799 = vxpose.xlu0.b32.cont [15/16] (narrow) %v783_v19, 8 }
 0x2b6   :  { %800 = vxpose.xlu0.b32.end [16/16] (narrow) %v784_v20, 8 }
 0x2fa   :  { %v801_v22 = vpop.trf.xlu0 }
 0x2fb   :  { %817 = vst [vmem:[%s1414_s7] sm:$0x1] %v801_v22 }

</bundles_post_ra>
